<compile_context>
chip_gen: v5e
topology: v5e:2x2
jax: 0.10.0
libtpu: 0.0.40
codegen_flags: <defaults>
</compile_context>

<pallas_src>
import functools

import jax
import jax.numpy as jnp
from jax import lax
from jax.experimental import pallas as pl
from jax.experimental.pallas import tpu as pltpu


_VMEM_BUDGET = 24 * 1024 * 1024        # conservative working-set target (v5e/v6e/v7x)
_VMEM_LIMIT = 48 * 1024 * 1024         # scoped-VMEM limit passed to Mosaic
_Y_RESIDENT_MAX_BYTES = 8 * 1024 * 1024


def _round_up(n, m):
    return ((n + m - 1) // m) * m


def _sublane_pack(itemsize):
    # Sublane packing of the second-minor dim: f32 -> 8, bf16 -> 16, int8/fp8 -> 32.
    return {4: 8, 2: 16, 1: 32}.get(int(itemsize), 8)


def _similarity_kernel(x_ref, y_ref, iyn_ref, o_ref, *, eps):
    # x_ref: (TM, H)   y_ref: (TN, H) or (By, H)   iyn_ref: (1, TN/By)   o_ref: (TM, TN/By)
    x = x_ref[...]

    # MXU: contract the hidden axis of both operands directly (no explicit y.T copy),
    # native input dtype with f32 accumulation.
    dots = lax.dot_general(
        x,
        y_ref[...],
        dimension_numbers=(((1,), (1,)), ((), ())),
        preferred_element_type=jnp.float32,
    )  # (TM, TN) f32

    # x-row norms computed on the tile already resident in VMEM (avoids a second
    # HBM pass over x).  Exact divide over only TM values.
    xf = x.astype(jnp.float32)
    xn = jnp.sqrt(jnp.sum(xf * xf, axis=-1, keepdims=True))   # (TM, 1)
    inv_x = 1.0 / jnp.maximum(xn, eps)                        # (TM, 1)

    # iyn already carries the 1/temp factor and the per-norm eps clamp.
    o_ref[...] = dots * (inv_x * iyn_ref[...])


def similarity(x, y, temp, eps=1e-8, block_m=1024, block_n=512,
               y_resident_max_bytes=_Y_RESIDENT_MAX_BYTES):
    """JAX/Pallas equivalent of Similarity(temp)(x, y) for the SimCSE pattern.

    x: (Bx, 1, H) or (Bx, H);  y: (1, By, H) or (By, H)  ->  (Bx, By) float32
    """
    if x.ndim == 3:
        x = jnp.squeeze(x, axis=1)      # (Bx, H)
    if y.ndim == 3:
        y = jnp.squeeze(y, axis=0)      # (By, H)

    bx, h = x.shape
    by, h2 = y.shape
    assert h == h2, (h, h2)

    itemsize = jnp.dtype(x.dtype).itemsize
    pack = _sublane_pack(itemsize)

    # Inverse y-row norms, laid out as a lane-aligned row, with 1/temp folded in.
    # Exact f32 divides over only By elements (no per-tile approx reciprocal).
    yf = y.astype(jnp.float32)
    yn = jnp.sqrt(jnp.sum(yf * yf, axis=-1, keepdims=True)).T       # (1, By)
    inv_yn = (1.0 / float(temp)) / jnp.maximum(yn, float(eps))      # (1, By) f32

    kernel = functools.partial(_similarity_kernel, eps=float(eps))
    y_bytes = by * h * itemsize

    if y_bytes <= y_resident_max_bytes:
        # ---- y-resident path: 1-D grid over x-row tiles; y/inv_yn have constant
        # block indices so the pipeline fetches them once. ----
        tm = _round_up(min(block_m, max(bx, 1)), pack)
        while tm > pack:
            need = (2 * tm * h * itemsize        # double-buffered x tile
                    + y_bytes                    # resident y
                    + 2 * tm * by * 4            # double-buffered f32 out tile
                    + by * 4)                    # resident inv_yn
            if need <= _VMEM_BUDGET:
                break
            tm = max(pack, _round_up(tm // 2, pack))

        grid = (pl.cdiv(bx, tm),)
        out = pl.pallas_call(
            kernel,
            out_shape=jax.ShapeDtypeStruct((bx, by), jnp.float32),
            grid=grid,
            in_specs=[
                pl.BlockSpec((tm, h), lambda i: (i, 0)),     # streamed x rows
                pl.BlockSpec((by, h), lambda i: (0, 0)),     # resident y (fetched once)
                pl.BlockSpec((1, by), lambda i: (0, 0)),     # resident 1/(temp*||y_j||)
            ],
            out_specs=pl.BlockSpec((tm, by), lambda i: (i, 0)),
            compiler_params=pltpu.CompilerParams(
                dimension_semantics=("parallel",),
                vmem_limit_bytes=_VMEM_LIMIT,
            ),
        )(x, y, inv_yn)
    else:
        # ---- streaming path: 2-D grid with large tiles (y too big to hold). ----
        tm = _round_up(min(block_m, max(bx, 1)), pack)
        tn = _round_up(min(block_n, max(by, 1)), 128)
        while tm > pack:
            need = (2 * (tm * h + tn * h) * itemsize   # double-buffered x and y tiles
                    + 2 * tm * tn * 4                  # double-buffered f32 out tile
                    + 2 * tn * 4)                      # inv_yn tiles
            if need <= _VMEM_BUDGET:
                break
            tm = max(pack, _round_up(tm // 2, pack))

        grid = (pl.cdiv(bx, tm), pl.cdiv(by, tn))
        out = pl.pallas_call(
            kernel,
            out_shape=jax.ShapeDtypeStruct((bx, by), jnp.float32),
            grid=grid,
            in_specs=[
                pl.BlockSpec((tm, h), lambda i, j: (i, 0)),   # x rows for this i-tile
                pl.BlockSpec((tn, h), lambda i, j: (j, 0)),   # y rows for this j-tile
                pl.BlockSpec((1, tn), lambda i, j: (0, j)),   # 1/(temp*||y_j||) row
            ],
            out_specs=pl.BlockSpec((tm, tn), lambda i, j: (i, j)),
            compiler_params=pltpu.CompilerParams(
                dimension_semantics=("parallel", "parallel"),
                vmem_limit_bytes=_VMEM_LIMIT,
            ),
        )(x, y, inv_yn)

    return out


def _reference(x, y, temp, eps=1e-8):
    # Pure-JAX reference mirroring torch.nn.CosineSimilarity(dim=-1) semantics.
    num = jnp.sum(x * y, axis=-1)
    nx = jnp.sqrt(jnp.sum(x * x, axis=-1))
    ny = jnp.sqrt(jnp.sum(y * y, axis=-1))
    return num / jnp.maximum(nx * ny, eps) / temp


if __name__ == "__main__":
    key = jax.random.PRNGKey(0)
    kx, ky = jax.random.split(key)

    B, H = 16, 32      # small SimCSE-like shapes: batch=16, hidden=32
    temp = 0.05        # typical SimCSE temperature

    # x: (B, 1, H), y: (1, B, H) -> broadcast cosine similarity -> (B, B)
    x = jax.random.normal(kx, (B, 1, H), dtype=jnp.float32)
    y = jax.random.normal(ky, (1, B, H), dtype=jnp.float32)

    ref = _reference(x, y, temp)

    # 1) Default path: y resident, 1-D grid over x-row tiles.
    out = jax.block_until_ready(similarity(x, y, temp))
    assert out.shape == (B, B), out.shape
    err = float(jnp.max(jnp.abs(out - ref)))
    assert jnp.allclose(out, ref, atol=1e-3, rtol=1e-3), err

    # 2) Forced streaming path with small tiles: exercises the 2-D grid and the
    #    masked (non-divisible) boundary blocks, no jnp.pad copies involved.
    out2 = jax.block_until_ready(
        similarity(x, y, temp, block_m=8, block_n=128, y_resident_max_bytes=0)
    )
    assert out2.shape == (B, B), out2.shape
    err2 = float(jnp.max(jnp.abs(out2 - ref)))
    assert jnp.allclose(out2, ref, atol=1e-3, rtol=1e-3), err2

    print("KERNEL_OK")
</pallas_src>

<mosaic_0001>
module attributes {stable_mosaic.version = 11 : i64} {
  func.func @_similarity_kernel(%arg0: i32, %arg1: memref<16x32xf32, #tpu.memory_space<vmem>>, %arg2: memref<16x32xf32, #tpu.memory_space<vmem>>, %arg3: memref<1x16xf32, #tpu.memory_space<vmem>>, %arg4: memref<16x16xf32, #tpu.memory_space<vmem>>) attributes {dimension_semantics = [#tpu.dimension_semantics<parallel>], iteration_bounds = array<i64: 1>, scalar_prefetch = 0 : i64, scratch_operands = 0 : i64, tpu.core_type = #tpu.core_type<tc>, window_params = [{transform_indices = @transform_0, window_bounds = array<i64: 16, 32>}, {pipeline_mode = #tpu.pipeline_mode<synchronous>, transform_indices = @transform_1, window_bounds = array<i64: 16, 32>}, {pipeline_mode = #tpu.pipeline_mode<synchronous>, transform_indices = @transform_2, window_bounds = array<i64: 1, 16>}, {transform_indices = @transform_3, window_bounds = array<i64: 16, 16>}]} {
    %c0 = arith.constant 0 : index
    %c0_0 = arith.constant 0 : index
    %0 = vector.load %arg1[%c0, %c0_0] : memref<16x32xf32, #tpu.memory_space<vmem>>, vector<16x32xf32>
    %c0_1 = arith.constant 0 : index
    %c0_2 = arith.constant 0 : index
    %1 = vector.load %arg2[%c0_1, %c0_2] : memref<16x32xf32, #tpu.memory_space<vmem>>, vector<16x32xf32>
    %cst = arith.constant dense<0.000000e+00> : vector<16x16xf32>
    %2 = tpu.matmul %0, %1, %cst {dimension_numbers = #tpu.dot_dimension_numbers<[1], [1], [0], [0], [0, 0, 1, 0], [], []>} : vector<16x32xf32>, vector<16x32xf32>, vector<16x16xf32> -> vector<16x16xf32>
    %3 = arith.mulf %0, %0 : vector<16x32xf32>
    %cst_3 = arith.constant dense<0.000000e+00> : vector<16xf32>
    %4 = vector.multi_reduction <add>, %3, %cst_3 [1] : vector<16x32xf32> to vector<16xf32>
    %5 = vector.shape_cast %4 : vector<16xf32> to vector<16x1xf32>
    %6 = math.sqrt %5 : vector<16x1xf32>
    %cst_4 = arith.constant 9.99999993E-9 : f32
    %7 = vector.broadcast %cst_4 : f32 to vector<16x1xf32>
    %8 = arith.maximumf %6, %7 : vector<16x1xf32>
    %cst_5 = arith.constant 1.000000e+00 : f32
    %9 = vector.broadcast %cst_5 : f32 to vector<16x1xf32>
    %10 = arith.divf %9, %8 : vector<16x1xf32>
    %c0_6 = arith.constant 0 : index
    %c0_7 = arith.constant 0 : index
    %11 = vector.load %arg3[%c0_6, %c0_7] : memref<1x16xf32, #tpu.memory_space<vmem>>, vector<1x16xf32>
    %12 = vector.broadcast %10 : vector<16x1xf32> to vector<16x16xf32>
    %13 = vector.broadcast %11 : vector<1x16xf32> to vector<16x16xf32>
    %14 = arith.mulf %12, %13 : vector<16x16xf32>
    %15 = arith.mulf %2, %14 : vector<16x16xf32>
    %c0_8 = arith.constant 0 : index
    %c0_9 = arith.constant 0 : index
    %16 = vector.load %arg4[%c0_8, %c0_9] : memref<16x16xf32, #tpu.memory_space<vmem>>, vector<16x16xf32>
    tpu.vector_store %arg4[%c0_8, %c0_9], %15 {strides = array<i32>} : memref<16x16xf32, #tpu.memory_space<vmem>>, vector<16x16xf32>,
    return
  }
  func.func @transform_0(%arg0: i32) -> (i32, i32) {
    %c0_i32 = arith.constant 0 : i32
    %c0_i32_0 = arith.constant 0 : i32
    return %arg0, %c0_i32 : i32, i32
  }
  func.func @transform_1(%arg0: i32) -> (i32, i32) {
    %c0_i32 = arith.constant 0 : i32
    %c0_i32_0 = arith.constant 0 : i32
    %c0_i32_1 = arith.constant 0 : i32
    return %c0_i32, %c0_i32_0 : i32, i32
  }
  func.func @transform_2(%arg0: i32) -> (i32, i32) {
    %c0_i32 = arith.constant 0 : i32
    %c0_i32_0 = arith.constant 0 : i32
    %c0_i32_1 = arith.constant 0 : i32
    return %c0_i32, %c0_i32_0 : i32, i32
  }
  func.func @transform_3(%arg0: i32) -> (i32, i32) {
    %c0_i32 = arith.constant 0 : i32
    %c0_i32_0 = arith.constant 0 : i32
    return %arg0, %c0_i32 : i32, i32
  }
}

</mosaic_0001>

<bundles_post_ra>
// kernel: tpu_custom_call.1
= control target key start
LH: loop header
LB: loop body
LE: loop exit
PB: predicated region body
PF: predicated region fallthrough
CT: control target
= control target key end

     0   :  { %8 = vsyncpa [#allocation3], 0  ;;  %s328_s0 = inlined_call_operand.hbm [shape: f32[16,32], index: 0, kind: input, shape index: {}]   ;;  %s329_s1 = inlined_call_operand.hbm [shape: f32[16,32], index: 1, kind: input, shape index: {}]   ;;  %s330_s2 = inlined_call_operand.vmem [shape: f32[1,16], index: 2, kind: input, shape index: {}]   ;;  %s331_s3 = inlined_call_operand.hbm [shape: f32[16,16], index: 3, kind: output, shape index: {}]  }
   0x1   :  { %9 = vsyncpa [#allocation6], 0 }
   0x2   :  { %10 = vsyncpa [#allocation4], 0  ;;  %s15_s14 = sshll.u32 %s328_s0, 4  ;;  %s280_s15 = smov [#allocation2]   ;;  %s16_s14 = int_to_ptr.hbm [resolvable:$true] %s15_s14 }
   0x3   :  { %s17_s16 = sshll.u32 %s280_s15, 4  ;;  %s28_s19 = sshll.u32 %s329_s1, 4  ;;  %s18_s16 = int_to_ptr.vmem [resolvable:$true] %s17_s16  ;;  %s29_s19 = int_to_ptr.hbm [resolvable:$true] %s28_s19 }
   0x4   :  { %s281_s20 = smov 128   ;;  %s282_s21 = smov 8  }
   0x5   :  { %23 = dma.hbm_to_vmem [thread:$0]  %s16_s14, 256, %s18_s16, [#allocation3], %s281_s20, %s281_s20, %s282_s21  }
   0x6   :  { %s283_s22 = smov [#allocation5]  }
   0x7   :  { %s30_s23 = sshll.u32 %s283_s22, 4  ;;  %s31_s23 = int_to_ptr.vmem [resolvable:$true] %s30_s23 }
   0x8   :  { %36 = dma.hbm_to_vmem [thread:$0]  %s29_s19, 256, %s31_s23, [#allocation6], %s281_s20, %s281_s20, %s282_s21  }
   0x9   :  { %274 = dma.done.wait [#allocation3], 256  }
   0xa   :  { %275 = vsyncadd [#allocation3], 4294967040 }
   0xb   :  { %276 = dma.done.wait [#allocation6], 256  }
   0xc   :  { %277 = vsyncadd [#allocation6], 4294967040  ;;  %v47_v0 = vld [vmem:[#allocation2] sm:$0xff]  ;;  %vm51_vm0 = vcmask 261120   ;;  %v50_v1 = vld [vmem:[#allocation5 + $0x8] sm:$0xff]  ;;  %vm159_vm9 = vcmask 130048  }
   0xd   :  { %v87_v2 = vmul.f32 %v47_v0, %v47_v0  ;;  %182 = vmatpush.xpose.msk.msra.mxu0 %vm51_vm0, %v50_v1  ;;  %186 = vmatpush.xpose.msk.msra.mxu1 %vm51_vm0, %v50_v1  ;;  %v48_v3 = vld [vmem:[#allocation2 + $0x8] sm:$0xff]  ;;  %v49_v4 = vld [vmem:[#allocation5] sm:$0xff]  ;;  %v193_v39 = vld [vmem:[%s330_s2] ss:$0 sm:$0xff]  ;;  %s284_s2 = smov [#allocation7]   ;;  %s168_s27 = sshll.u32 %s331_s3, 4  ;;  %s169_s27 = int_to_ptr.hbm [resolvable:$true] %s168_s27 }
   0xe   :  { %v88_v6 = vmul.f32 %v48_v3, %v48_v3  ;;  %s166_s24 = sshll.u32 %s284_s2, 4  ;;  %s167_s24 = int_to_ptr.vmem [resolvable:$true] %s166_s24 }
   0xf   :  { %v89_v5 = vsel %vm51_vm0, %v87_v2, 0.0 }
  0x10   :  { %90 = vadd.xlane.f32.xlu0 %v89_v5  ;;  %v92_v7 = vsel %vm51_vm0, %v88_v6, 0.0 }
  0x11   :  { %183 = vmatpush.xpose.msk.msra.mxu0 %vm51_vm0, %v49_v4  ;;  %187 = vmatpush.xpose.msk.msra.mxu1 %vm51_vm0, %v49_v4 }
  0x14   :  { %184 = vmatmul.msk.f32.vlgmr.msra.gmra.mxu0 %vm51_vm0, %v47_v0  ;;  %185 = vmatmul.msk.f32.vlgmr.msra.gmra.mxu1 %vm51_vm0, %v48_v3 }
  0x18   :  { %93 = vadd.xlane.f32.xlu0 %v92_v7 }
  0x83   :  { %v91_v8 = vpop.xlane.xlu0 %90 }
  0x84   :  { %194 = vrsqrt.f32 %v91_v8  ;;  %vm102_vm1 = vcmp.eq.f32.partialorder %v91_v8, inf  ;;  %v105_v20 = vand.u32 2147483648, %v91_v8  ;;  %vm104_vm2 = vcmp.eq.f32.partialorder %v91_v8, 0.0 }
  0x8a   :  { %v195_v9 = vpop.eup %194 }
  0x8b   :  { %v96_v10 = vmul.f32 %v195_v9, %v91_v8  ;;  %v94_v11 = vpop.xlane.xlu0 %93 }
  0x8c   :  { %196 = vrsqrt.f32 %v94_v11  ;;  %vm114_vm3 = vcmp.eq.f32.partialorder %v94_v11, inf  ;;  %v117_v28 = vand.u32 2147483648, %v94_v11  ;;  %vm116_vm4 = vcmp.eq.f32.partialorder %v94_v11, 0.0 }
  0x8d   :  { %v97_v12 = vmul.f32 %v195_v9, %v96_v10 }
  0x8f   :  { %v98_v13 = vmul.f32 0.5, %v97_v12 }
  0x91   :  { %v99_v14 = vsub.f32 1.5, %v98_v13  ;;  %v81_v44 = vpop.f32.mrf.mxu0  ;;  %v84_v55 = vpop.f32.mrf.mxu1 }
  0x92   :  { %v197_v15 = vpop.eup %196 }
  0x93   :  { %v100_v16 = vmul.f32 %v195_v9, %v99_v14  ;;  %v108_v17 = vmul.f32 %v197_v15, %v94_v11 }
  0x95   :  { %v101_v18 = vmul.f32 %v100_v16, %v91_v8  ;;  %v109_v19 = vmul.f32 %v197_v15, %v108_v17 }
  0x97   :  { %v103_v21 = vsel %vm102_vm1, %v91_v8, %v101_v18  ;;  %v110_v22 = vmul.f32 0.5, %v109_v19 }
  0x98   :  { %v106_v23 = vsel %vm104_vm2, %v105_v20, %v103_v21 }
  0x99   :  { %v119_v24 = vmax.f32 %v106_v23, 1e-08  ;;  %v111_v25 = vsub.f32 1.5, %v110_v22 }
  0x9b   :  { %198 = vrcp.f32 %v119_v24  ;;  %v112_v26 = vmul.f32 %v197_v15, %v111_v25  ;;  %v132_v35 = vand.u32 2147483648, %v119_v24  ;;  %v130_v37 = vand.u32 2147483647, %v119_v24 }
  0x9c   :  { %vm126_vm6 = vweird.f32 %v119_v24 }
  0x9d   :  { %v113_v27 = vmul.f32 %v112_v26, %v94_v11  ;;  %v133_v41 = vor.u32 1.1754944e-38, %v132_v35  ;;  %vm131_vm8 = vcmp.eq.f32.partialorder %v130_v37, 8.507059e+37 }
  0x9f   :  { %v115_v29 = vsel %vm114_vm3, %v94_v11, %v113_v27 }
  0xa0   :  { %v118_v30 = vsel %vm116_vm4, %v117_v28, %v115_v29 }
  0xa1   :  { %v199_v31 = vpop.eup %198  ;;  %v120_v32 = vmax.f32 %v118_v30, 1e-08 }
  0xa2   :  { %v122_v33 = vmul.f32 %v199_v31, %v119_v24  ;;  %vm127_vm5 = vweird.f32 %v199_v31 }
  0xa3   :  { %200 = vrcp.f32 %v120_v32  ;;  %vm128_vm7 = vmor %vm126_vm6, %vm127_vm5  ;;  %v147_v48 = vand.u32 2147483648, %v120_v32  ;;  %v145_v51 = vand.u32 2147483647, %v120_v32  ;;  %vm141_vm11 = vweird.f32 %v120_v32 }
  0xa4   :  { %v123_v34 = vsub.f32 1.0, %v122_v33 }
  0xa5   :  { %v148_v53 = vor.u32 1.1754944e-38, %v147_v48  ;;  %vm146_vm13 = vcmp.eq.f32.partialorder %v145_v51, 8.507059e+37 }
  0xa6   :  { %v124_v36 = vmul.f32 %v199_v31, %v123_v34 }
  0xa8   :  { %v125_v38 = vadd.f32 %v199_v31, %v124_v36 }
  0xa9   :  { %v201_v40 = vpop.eup %200 }
  0xaa   :  { %v129_v42 = vsel %vm128_vm7, %v199_v31, %v125_v38  ;;  %v137_v43 = vmul.f32 %v201_v40, %v120_v32  ;;  %vm142_vm10 = vweird.f32 %v201_v40 }
  0xab   :  { %v134_v45 = vsel %vm131_vm8, %v133_v41, %v129_v42  ;;  %vm143_vm12 = vmor %vm141_vm11, %vm142_vm10 }
  0xac   :  { %v155_v46 = vmul.f32 %v193_v39, %v134_v45  ;;  %v138_v47 = vsub.f32 1.0, %v137_v43 }
  0xae   :  { %v157_v49 = vmul.f32 %v155_v46, %v81_v44  ;;  %v139_v50 = vmul.f32 %v201_v40, %v138_v47 }
  0xb0   :  { %160 = vst.msk [vmem:[#allocation7] sm:$0xff] %vm159_vm9, %v157_v49  ;;  %v140_v52 = vadd.f32 %v201_v40, %v139_v50 }
  0xb2   :  { %v144_v54 = vsel %vm143_vm12, %v201_v40, %v140_v52 }
  0xb3   :  { %v149_v56 = vsel %vm146_vm13, %v148_v53, %v144_v54 }
  0xb4   :  { %v156_v57 = vmul.f32 %v193_v39, %v149_v56 }
  0xb6   :  { %v158_v58 = vmul.f32 %v156_v57, %v84_v55 }
  0xb8   :  { %161 = vst.msk [vmem:[#allocation7 + $0x8] sm:$0xff] %vm159_vm9, %v158_v58 }
  0xb9   :  { %174 = dma.vmem_to_hbm [thread:$0]  %s167_s24, 256, %s169_s27, [#allocation4], %s281_s20, %s281_s20, %s282_s21  }
  0xba   :  { %278 = dma.done.wait [#allocation4], 256  }
  0xbb   :  { %279 = vsyncadd [#allocation4], 4294967040 }
  0xbc   :  { %179 = vsyncpa [#allocation3], 1 }
  0xbd   :  { %180 = vsyncpa [#allocation6], 1 }
  0xbe   :  { %181 = vsyncpa [#allocation4], 1 }

</bundles_post_ra>
